<compile_context>
chip_gen: v7x
topology: tpu7x:2x2x1
jax: 0.10.0
libtpu: 0.0.40
codegen_flags: <defaults>
</compile_context>

<pallas_src>
import functools

import jax
import jax.numpy as jnp
from jax.experimental import pallas as pl
from jax.experimental.pallas import tpu as pltpu

N_UNIT = 256
LANE = 128


def _round_up(x, m):
    return ((x + m - 1) // m) * m


def _cond_diffusion_kernel(
    xct_ref,              # (TB, Kin)      f32   [x | c | t]
    w1_ref, b1_ref,       # (Kin, 3N) bf16, (1, 3N) f32   block-diag fused l1/l1_cond/l1_beta
    w2x_ref, b2x_ref,     # (N, N)   bf16, (1, N)  f32    l2
    w2c_ref, b2c_ref,     # l2_cond
    w2b_ref, b2b_ref,     # l2_beta
    w3_ref, b3_ref,       # l3
    w4_ref, b4_ref,       # (N, LANE) bf16, (1, LANE) f32  l4 (lane-padded)
    out_ref,              # (TB, LANE) f32
):
    f32 = jnp.float32
    bf16 = jnp.bfloat16
    n = N_UNIT

    def linear(h, w_ref, b_ref):
        # bf16 operands into the MXU, f32 accumulation, f32 bias add.
        return jnp.dot(h.astype(bf16), w_ref[...],
                       preferred_element_type=f32) + b_ref[...]

    # Fused first layer: one MXU pass + one bias/ReLU pass for all 3 branches.
    h1 = jnp.maximum(linear(xct_ref[...], w1_ref, b1_ref), 0.0)  # (TB, 3N) f32
    xx = h1[:, 0 * n:1 * n]
    cc = h1[:, 1 * n:2 * n]
    bb = h1[:, 2 * n:3 * n]

    # Second layer per branch (kept as separate 256x256 MXU passes).
    xx = jnp.maximum(linear(xx, w2x_ref, b2x_ref), 0.0)
    cc = jnp.maximum(linear(cc, w2c_ref, b2c_ref), 0.0)
    bb = jnp.maximum(linear(bb, w2b_ref, b2b_ref), 0.0)

    # Merge + head.
    h = jnp.maximum(linear(xx + bb + cc, w3_ref, b3_ref), 0.0)
    out_ref[...] = linear(h, w4_ref, b4_ref).astype(out_ref.dtype)


def prepare_params(params, data_dim, cond_dim):
    """One-time weight preprocessing: fuse l1 weights block-diagonally,
    lane-pad the head, cast weights to bf16 (biases stay f32)."""
    n = N_UNIT
    k_in = data_dim + cond_dim + 1
    bf16 = jnp.bfloat16

    w1_all = jnp.zeros((k_in, 3 * n), jnp.float32)
    w1_all = w1_all.at[:data_dim, 0 * n:1 * n].set(params["w1"])
    w1_all = w1_all.at[data_dim:data_dim + cond_dim, 1 * n:2 * n].set(params["w1_cond"])
    w1_all = w1_all.at[data_dim + cond_dim:, 2 * n:3 * n].set(params["w1_beta"])
    b1_all = jnp.concatenate(
        [params["b1"], params["b1_cond"], params["b1_beta"]], axis=1)

    out_pad = _round_up(data_dim, LANE)
    w4_pad = jnp.zeros((n, out_pad), jnp.float32).at[:, :data_dim].set(params["w4"])
    b4_pad = jnp.zeros((1, out_pad), jnp.float32).at[:, :data_dim].set(params["b4"])

    return dict(
        w1=w1_all.astype(bf16), b1=b1_all,
        w2=params["w2"].astype(bf16), b2=params["b2"],
        w2_cond=params["w2_cond"].astype(bf16), b2_cond=params["b2_cond"],
        w2_beta=params["w2_beta"].astype(bf16), b2_beta=params["b2_beta"],
        w3=params["w3"].astype(bf16), b3=params["b3"],
        w4=w4_pad.astype(bf16), b4=b4_pad,
    )


@functools.partial(jax.jit, static_argnames=("batch_tile",))
def conditional_diffusion_net(x, c, t, prep, *, batch_tile=256):
    """x: (B, data_dim), c: (B, cond_dim), t: (B, 1) -> (B, data_dim) f32."""
    batch, data_dim = x.shape
    n = N_UNIT
    out_pad = prep["w4"].shape[1]

    # Fuse the three tiny inputs into one lane-contiguous LHS.
    xct = jnp.concatenate([x, c, t], axis=1).astype(jnp.float32)
    k_in = xct.shape[1]

    # Sublane-aligned batch tiling (pad with zero rows, sliced off at the end).
    pb = _round_up(batch, 8)
    tb = _round_up(min(batch_tile, pb), 8)
    pb = _round_up(pb, tb)
    if pb != batch:
        xct = jnp.pad(xct, ((0, pb - batch), (0, 0)))
    n_tiles = pb // tb

    const = lambda i: (0, 0)
    wspec = lambda shape: pl.BlockSpec(shape, const)  # weight resident across tiles

    flops = 2 * pb * (k_in * 3 * n + 4 * n * n + n * out_pad)
    bytes_accessed = (
        xct.size * 4 + pb * out_pad * 4
        + sum(int(prep[k].size) * 2 for k in
              ("w1", "w2", "w2_cond", "w2_beta", "w3", "w4"))
        + sum(int(prep[k].size) * 4 for k in
              ("b1", "b2", "b2_cond", "b2_beta", "b3", "b4"))
    )

    out_padded = pl.pallas_call(
        _cond_diffusion_kernel,
        out_shape=jax.ShapeDtypeStruct((pb, out_pad), jnp.float32),
        grid=(n_tiles,),
        in_specs=[
            pl.BlockSpec((tb, k_in), lambda i: (i, 0)),   # xct (streamed)
            wspec((k_in, 3 * n)), wspec((1, 3 * n)),      # fused l1
            wspec((n, n)), wspec((1, n)),                 # l2
            wspec((n, n)), wspec((1, n)),                 # l2_cond
            wspec((n, n)), wspec((1, n)),                 # l2_beta
            wspec((n, n)), wspec((1, n)),                 # l3
            wspec((n, out_pad)), wspec((1, out_pad)),     # l4 (lane-padded)
        ],
        out_specs=pl.BlockSpec((tb, out_pad), lambda i: (i, 0)),
        compiler_params=pltpu.CompilerParams(
            dimension_semantics=("parallel",)),
        cost_estimate=pl.CostEstimate(
            flops=flops, transcendentals=0, bytes_accessed=bytes_accessed),
    )(
        xct,
        prep["w1"], prep["b1"],
        prep["w2"], prep["b2"],
        prep["w2_cond"], prep["b2_cond"],
        prep["w2_beta"], prep["b2_beta"],
        prep["w3"], prep["b3"],
        prep["w4"], prep["b4"],
    )

    return out_padded[:batch, :data_dim]


def init_params(key, data_dim, cond_dim, n_unit=N_UNIT):
    """PyTorch-style uniform(-1/sqrt(fan_in), 1/sqrt(fan_in)) init.
    Weights stored as (in_features, out_features); biases as (1, out_features)."""
    layer_shapes = {
        "1": (data_dim, n_unit),
        "2": (n_unit, n_unit),
        "1_beta": (1, n_unit),
        "2_beta": (n_unit, n_unit),
        "1_cond": (cond_dim, n_unit),
        "2_cond": (n_unit, n_unit),
        "3": (n_unit, n_unit),
        "4": (n_unit, data_dim),
    }
    params = {}
    keys = jax.random.split(key, 2 * len(layer_shapes))
    for i, (name, (fan_in, fan_out)) in enumerate(layer_shapes.items()):
        bound = 1.0 / (fan_in ** 0.5)
        params[f"w{name}"] = jax.random.uniform(
            keys[2 * i], (fan_in, fan_out), jnp.float32, -bound, bound)
        params[f"b{name}"] = jax.random.uniform(
            keys[2 * i + 1], (1, fan_out), jnp.float32, -bound, bound)
    return params


def _reference_forward_f32(x, c, t, p):
    relu = lambda v: jnp.maximum(v, 0.0)
    xx = relu(x @ p["w1"] + p["b1"])
    xx = relu(xx @ p["w2"] + p["b2"])
    cc = relu(c @ p["w1_cond"] + p["b1_cond"])
    cc = relu(cc @ p["w2_cond"] + p["b2_cond"])
    bb = relu(t @ p["w1_beta"] + p["b1_beta"])
    bb = relu(bb @ p["w2_beta"] + p["b2_beta"])
    h = relu((xx + bb + cc) @ p["w3"] + p["b3"])
    return h @ p["w4"] + p["b4"]


def _reference_forward_bf16(x, c, t, p):
    # Mirrors the kernel's precision: bf16 matmul operands, f32 accum/bias/ReLU.
    bf = lambda a: a.astype(jnp.bfloat16).astype(jnp.float32)
    relu = lambda v: jnp.maximum(v, 0.0)
    lin = lambda h, w, b: bf(h) @ bf(w) + b
    xx = relu(lin(x, p["w1"], p["b1"]))
    xx = relu(lin(xx, p["w2"], p["b2"]))
    cc = relu(lin(c, p["w1_cond"], p["b1_cond"]))
    cc = relu(lin(cc, p["w2_cond"], p["b2_cond"]))
    bb = relu(lin(t, p["w1_beta"], p["b1_beta"]))
    bb = relu(lin(bb, p["w2_beta"], p["b2_beta"]))
    h = relu(lin(xx + bb + cc, p["w3"], p["b3"]))
    return lin(h, p["w4"], p["b4"])


if __name__ == "__main__":
    data_dim = 1   # 'action' column -> x[:, None]
    cond_dim = 2   # ['position', 'velocity']
    batch = 8

    key = jax.random.PRNGKey(0)
    k_params, k_x, k_c, k_t = jax.random.split(key, 4)

    params = init_params(k_params, data_dim, cond_dim)
    x = jax.random.normal(k_x, (batch, data_dim), jnp.float32)
    c = jax.random.normal(k_c, (batch, cond_dim), jnp.float32)
    t = jax.random.uniform(k_t, (batch, 1), jnp.float32)

    prep = prepare_params(params, data_dim, cond_dim)
    out = conditional_diffusion_net(x, c, t, prep)
    out = jax.block_until_ready(out)
    assert out.shape == (batch, data_dim)

    # Correctness: match a bf16-precision reference tightly, f32 reference loosely.
    ref_bf16 = _reference_forward_bf16(x, c, t, params)
    assert jnp.allclose(out, ref_bf16, atol=1e-2, rtol=1e-2), \
        "mismatch vs bf16-precision JAX reference"
    ref_f32 = _reference_forward_f32(x, c, t, params)
    assert jnp.allclose(out, ref_f32, atol=1e-1, rtol=1e-1), \
        "mismatch vs f32 JAX reference (beyond bf16 tolerance)"

    print("KERNEL_OK")
</pallas_src>

<mosaic_0001>
module attributes {stable_mosaic.version = 11 : i64} {
  func.func @_cond_diffusion_kernel(%arg0: i32, %arg1: memref<8x4xf32, #tpu.memory_space<vmem>>, %arg2: memref<4x768xbf16, #tpu.memory_space<vmem>>, %arg3: memref<1x768xf32, #tpu.memory_space<vmem>>, %arg4: memref<256x256xbf16, #tpu.memory_space<vmem>>, %arg5: memref<1x256xf32, #tpu.memory_space<vmem>>, %arg6: memref<256x256xbf16, #tpu.memory_space<vmem>>, %arg7: memref<1x256xf32, #tpu.memory_space<vmem>>, %arg8: memref<256x256xbf16, #tpu.memory_space<vmem>>, %arg9: memref<1x256xf32, #tpu.memory_space<vmem>>, %arg10: memref<256x256xbf16, #tpu.memory_space<vmem>>, %arg11: memref<1x256xf32, #tpu.memory_space<vmem>>, %arg12: memref<256x128xbf16, #tpu.memory_space<vmem>>, %arg13: memref<1x128xf32, #tpu.memory_space<vmem>>, %arg14: memref<8x128xf32, #tpu.memory_space<vmem>>) attributes {dimension_semantics = [#tpu.dimension_semantics<parallel>], iteration_bounds = array<i64: 1>, scalar_prefetch = 0 : i64, scratch_operands = 0 : i64, tpu.core_type = #tpu.core_type<tc>, window_params = [{transform_indices = @transform_0, window_bounds = array<i64: 8, 4>}, {pipeline_mode = #tpu.pipeline_mode<synchronous>, transform_indices = @transform_1, window_bounds = array<i64: 4, 768>}, {pipeline_mode = #tpu.pipeline_mode<synchronous>, transform_indices = @transform_2, window_bounds = array<i64: 1, 768>}, {pipeline_mode = #tpu.pipeline_mode<synchronous>, transform_indices = @transform_3, window_bounds = array<i64: 256, 256>}, {pipeline_mode = #tpu.pipeline_mode<synchronous>, transform_indices = @transform_4, window_bounds = array<i64: 1, 256>}, {pipeline_mode = #tpu.pipeline_mode<synchronous>, transform_indices = @transform_5, window_bounds = array<i64: 256, 256>}, {pipeline_mode = #tpu.pipeline_mode<synchronous>, transform_indices = @transform_6, window_bounds = array<i64: 1, 256>}, {pipeline_mode = #tpu.pipeline_mode<synchronous>, transform_indices = @transform_7, window_bounds = array<i64: 256, 256>}, {pipeline_mode = #tpu.pipeline_mode<synchronous>, transform_indices = @transform_8, window_bounds = array<i64: 1, 256>}, {pipeline_mode = #tpu.pipeline_mode<synchronous>, transform_indices = @transform_9, window_bounds = array<i64: 256, 256>}, {pipeline_mode = #tpu.pipeline_mode<synchronous>, transform_indices = @transform_10, window_bounds = array<i64: 1, 256>}, {pipeline_mode = #tpu.pipeline_mode<synchronous>, transform_indices = @transform_11, window_bounds = array<i64: 256, 128>}, {pipeline_mode = #tpu.pipeline_mode<synchronous>, transform_indices = @transform_12, window_bounds = array<i64: 1, 128>}, {transform_indices = @transform_13, window_bounds = array<i64: 8, 128>}]} {
    %c0 = arith.constant 0 : index
    %c0_0 = arith.constant 0 : index
    %0 = vector.load %arg1[%c0, %c0_0] : memref<8x4xf32, #tpu.memory_space<vmem>>, vector<8x4xf32>
    %1 = arith.truncf %0 : vector<8x4xf32> to vector<8x4xbf16>
    %c0_1 = arith.constant 0 : index
    %c0_2 = arith.constant 0 : index
    %2 = vector.load %arg2[%c0_1, %c0_2] : memref<4x768xbf16, #tpu.memory_space<vmem>>, vector<4x768xbf16>
    %cst = arith.constant dense<0.000000e+00> : vector<8x768xf32>
    %3 = tpu.matmul %1, %2, %cst {dimension_numbers = #tpu.dot_dimension_numbers<[1], [0], [0], [1], [0, 0, 1, 1], [], []>} : vector<8x4xbf16>, vector<4x768xbf16>, vector<8x768xf32> -> vector<8x768xf32>
    %c0_3 = arith.constant 0 : index
    %c0_4 = arith.constant 0 : index
    %4 = vector.load %arg3[%c0_3, %c0_4] : memref<1x768xf32, #tpu.memory_space<vmem>>, vector<1x768xf32>
    %5 = vector.broadcast %4 : vector<1x768xf32> to vector<8x768xf32>
    %6 = arith.addf %3, %5 : vector<8x768xf32>
    %cst_5 = arith.constant 0.000000e+00 : f32
    %7 = vector.broadcast %cst_5 : f32 to vector<8x768xf32>
    %8 = arith.maximumf %6, %7 : vector<8x768xf32>
    %9 = vector.extract_strided_slice %8 {offsets = [0, 0], sizes = [8, 256], strides = [1, 1]} : vector<8x768xf32> to vector<8x256xf32>
    %10 = vector.extract_strided_slice %8 {offsets = [0, 256], sizes = [8, 256], strides = [1, 1]} : vector<8x768xf32> to vector<8x256xf32>
    %11 = vector.extract_strided_slice %8 {offsets = [0, 512], sizes = [8, 256], strides = [1, 1]} : vector<8x768xf32> to vector<8x256xf32>
    %12 = arith.truncf %9 : vector<8x256xf32> to vector<8x256xbf16>
    %c0_6 = arith.constant 0 : index
    %c0_7 = arith.constant 0 : index
    %13 = vector.load %arg4[%c0_6, %c0_7] : memref<256x256xbf16, #tpu.memory_space<vmem>>, vector<256x256xbf16>
    %cst_8 = arith.constant dense<0.000000e+00> : vector<8x256xf32>
    %14 = tpu.matmul %12, %13, %cst_8 {dimension_numbers = #tpu.dot_dimension_numbers<[1], [0], [0], [1], [0, 0, 1, 1], [], []>} : vector<8x256xbf16>, vector<256x256xbf16>, vector<8x256xf32> -> vector<8x256xf32>
    %c0_9 = arith.constant 0 : index
    %c0_10 = arith.constant 0 : index
    %15 = vector.load %arg5[%c0_9, %c0_10] : memref<1x256xf32, #tpu.memory_space<vmem>>, vector<1x256xf32>
    %16 = vector.broadcast %15 : vector<1x256xf32> to vector<8x256xf32>
    %17 = arith.addf %14, %16 : vector<8x256xf32>
    %cst_11 = arith.constant 0.000000e+00 : f32
    %18 = vector.broadcast %cst_11 : f32 to vector<8x256xf32>
    %19 = arith.maximumf %17, %18 : vector<8x256xf32>
    %20 = arith.truncf %10 : vector<8x256xf32> to vector<8x256xbf16>
    %c0_12 = arith.constant 0 : index
    %c0_13 = arith.constant 0 : index
    %21 = vector.load %arg6[%c0_12, %c0_13] : memref<256x256xbf16, #tpu.memory_space<vmem>>, vector<256x256xbf16>
    %cst_14 = arith.constant dense<0.000000e+00> : vector<8x256xf32>
    %22 = tpu.matmul %20, %21, %cst_14 {dimension_numbers = #tpu.dot_dimension_numbers<[1], [0], [0], [1], [0, 0, 1, 1], [], []>} : vector<8x256xbf16>, vector<256x256xbf16>, vector<8x256xf32> -> vector<8x256xf32>
    %c0_15 = arith.constant 0 : index
    %c0_16 = arith.constant 0 : index
    %23 = vector.load %arg7[%c0_15, %c0_16] : memref<1x256xf32, #tpu.memory_space<vmem>>, vector<1x256xf32>
    %24 = vector.broadcast %23 : vector<1x256xf32> to vector<8x256xf32>
    %25 = arith.addf %22, %24 : vector<8x256xf32>
    %cst_17 = arith.constant 0.000000e+00 : f32
    %26 = vector.broadcast %cst_17 : f32 to vector<8x256xf32>
    %27 = arith.maximumf %25, %26 : vector<8x256xf32>
    %28 = arith.truncf %11 : vector<8x256xf32> to vector<8x256xbf16>
    %c0_18 = arith.constant 0 : index
    %c0_19 = arith.constant 0 : index
    %29 = vector.load %arg8[%c0_18, %c0_19] : memref<256x256xbf16, #tpu.memory_space<vmem>>, vector<256x256xbf16>
    %cst_20 = arith.constant dense<0.000000e+00> : vector<8x256xf32>
    %30 = tpu.matmul %28, %29, %cst_20 {dimension_numbers = #tpu.dot_dimension_numbers<[1], [0], [0], [1], [0, 0, 1, 1], [], []>} : vector<8x256xbf16>, vector<256x256xbf16>, vector<8x256xf32> -> vector<8x256xf32>
    %c0_21 = arith.constant 0 : index
    %c0_22 = arith.constant 0 : index
    %31 = vector.load %arg9[%c0_21, %c0_22] : memref<1x256xf32, #tpu.memory_space<vmem>>, vector<1x256xf32>
    %32 = vector.broadcast %31 : vector<1x256xf32> to vector<8x256xf32>
    %33 = arith.addf %30, %32 : vector<8x256xf32>
    %cst_23 = arith.constant 0.000000e+00 : f32
    %34 = vector.broadcast %cst_23 : f32 to vector<8x256xf32>
    %35 = arith.maximumf %33, %34 : vector<8x256xf32>
    %36 = arith.addf %19, %35 : vector<8x256xf32>
    %37 = arith.addf %36, %27 : vector<8x256xf32>
    %38 = arith.truncf %37 : vector<8x256xf32> to vector<8x256xbf16>
    %c0_24 = arith.constant 0 : index
    %c0_25 = arith.constant 0 : index
    %39 = vector.load %arg10[%c0_24, %c0_25] : memref<256x256xbf16, #tpu.memory_space<vmem>>, vector<256x256xbf16>
    %cst_26 = arith.constant dense<0.000000e+00> : vector<8x256xf32>
    %40 = tpu.matmul %38, %39, %cst_26 {dimension_numbers = #tpu.dot_dimension_numbers<[1], [0], [0], [1], [0, 0, 1, 1], [], []>} : vector<8x256xbf16>, vector<256x256xbf16>, vector<8x256xf32> -> vector<8x256xf32>
    %c0_27 = arith.constant 0 : index
    %c0_28 = arith.constant 0 : index
    %41 = vector.load %arg11[%c0_27, %c0_28] : memref<1x256xf32, #tpu.memory_space<vmem>>, vector<1x256xf32>
    %42 = vector.broadcast %41 : vector<1x256xf32> to vector<8x256xf32>
    %43 = arith.addf %40, %42 : vector<8x256xf32>
    %cst_29 = arith.constant 0.000000e+00 : f32
    %44 = vector.broadcast %cst_29 : f32 to vector<8x256xf32>
    %45 = arith.maximumf %43, %44 : vector<8x256xf32>
    %46 = arith.truncf %45 : vector<8x256xf32> to vector<8x256xbf16>
    %c0_30 = arith.constant 0 : index
    %c0_31 = arith.constant 0 : index
    %47 = vector.load %arg12[%c0_30, %c0_31] : memref<256x128xbf16, #tpu.memory_space<vmem>>, vector<256x128xbf16>
    %cst_32 = arith.constant dense<0.000000e+00> : vector<8x128xf32>
    %48 = tpu.matmul %46, %47, %cst_32 {dimension_numbers = #tpu.dot_dimension_numbers<[1], [0], [0], [1], [0, 0, 1, 1], [], []>} : vector<8x256xbf16>, vector<256x128xbf16>, vector<8x128xf32> -> vector<8x128xf32>
    %c0_33 = arith.constant 0 : index
    %c0_34 = arith.constant 0 : index
    %49 = vector.load %arg13[%c0_33, %c0_34] : memref<1x128xf32, #tpu.memory_space<vmem>>, vector<1x128xf32>
    %50 = vector.broadcast %49 : vector<1x128xf32> to vector<8x128xf32>
    %51 = arith.addf %48, %50 : vector<8x128xf32>
    %c0_35 = arith.constant 0 : index
    %c0_36 = arith.constant 0 : index
    %52 = vector.load %arg14[%c0_35, %c0_36] : memref<8x128xf32, #tpu.memory_space<vmem>>, vector<8x128xf32>
    tpu.vector_store %arg14[%c0_35, %c0_36], %51 {strides = array<i32>} : memref<8x128xf32, #tpu.memory_space<vmem>>, vector<8x128xf32>,
    return
  }
  func.func @transform_0(%arg0: i32) -> (i32, i32) {
    %c0_i32 = arith.constant 0 : i32
    %c0_i32_0 = arith.constant 0 : i32
    return %arg0, %c0_i32 : i32, i32
  }
  func.func @transform_1(%arg0: i32) -> (i32, i32) {
    %c0_i32 = arith.constant 0 : i32
    %c0_i32_0 = arith.constant 0 : i32
    %c0_i32_1 = arith.constant 0 : i32
    return %c0_i32, %c0_i32_0 : i32, i32
  }
  func.func @transform_2(%arg0: i32) -> (i32, i32) {
    %c0_i32 = arith.constant 0 : i32
    %c0_i32_0 = arith.constant 0 : i32
    %c0_i32_1 = arith.constant 0 : i32
    return %c0_i32, %c0_i32_0 : i32, i32
  }
  func.func @transform_3(%arg0: i32) -> (i32, i32) {
    %c0_i32 = arith.constant 0 : i32
    %c0_i32_0 = arith.constant 0 : i32
    %c0_i32_1 = arith.constant 0 : i32
    return %c0_i32, %c0_i32_0 : i32, i32
  }
  func.func @transform_4(%arg0: i32) -> (i32, i32) {
    %c0_i32 = arith.constant 0 : i32
    %c0_i32_0 = arith.constant 0 : i32
    %c0_i32_1 = arith.constant 0 : i32
    return %c0_i32, %c0_i32_0 : i32, i32
  }
  func.func @transform_5(%arg0: i32) -> (i32, i32) {
    %c0_i32 = arith.constant 0 : i32
    %c0_i32_0 = arith.constant 0 : i32
    %c0_i32_1 = arith.constant 0 : i32
    return %c0_i32, %c0_i32_0 : i32, i32
  }
  func.func @transform_6(%arg0: i32) -> (i32, i32) {
    %c0_i32 = arith.constant 0 : i32
    %c0_i32_0 = arith.constant 0 : i32
    %c0_i32_1 = arith.constant 0 : i32
    return %c0_i32, %c0_i32_0 : i32, i32
  }
  func.func @transform_7(%arg0: i32) -> (i32, i32) {
    %c0_i32 = arith.constant 0 : i32
    %c0_i32_0 = arith.constant 0 : i32
    %c0_i32_1 = arith.constant 0 : i32
    return %c0_i32, %c0_i32_0 : i32, i32
  }
  func.func @transform_8(%arg0: i32) -> (i32, i32) {
    %c0_i32 = arith.constant 0 : i32
    %c0_i32_0 = arith.constant 0 : i32
    %c0_i32_1 = arith.constant 0 : i32
    return %c0_i32, %c0_i32_0 : i32, i32
  }
  func.func @transform_9(%arg0: i32) -> (i32, i32) {
    %c0_i32 = arith.constant 0 : i32
    %c0_i32_0 = arith.constant 0 : i32
    %c0_i32_1 = arith.constant 0 : i32
    return %c0_i32, %c0_i32_0 : i32, i32
  }
  func.func @transform_10(%arg0: i32) -> (i32, i32) {
    %c0_i32 = arith.constant 0 : i32
    %c0_i32_0 = arith.constant 0 : i32
    %c0_i32_1 = arith.constant 0 : i32
    return %c0_i32, %c0_i32_0 : i32, i32
  }
  func.func @transform_11(%arg0: i32) -> (i32, i32) {
    %c0_i32 = arith.constant 0 : i32
    %c0_i32_0 = arith.constant 0 : i32
    %c0_i32_1 = arith.constant 0 : i32
    return %c0_i32, %c0_i32_0 : i32, i32
  }
  func.func @transform_12(%arg0: i32) -> (i32, i32) {
    %c0_i32 = arith.constant 0 : i32
    %c0_i32_0 = arith.constant 0 : i32
    %c0_i32_1 = arith.constant 0 : i32
    return %c0_i32, %c0_i32_0 : i32, i32
  }
  func.func @transform_13(%arg0: i32) -> (i32, i32) {
    %c0_i32 = arith.constant 0 : i32
    %c0_i32_0 = arith.constant 0 : i32
    return %arg0, %c0_i32 : i32, i32
  }
}

</mosaic_0001>

<bundles_post_ra>
// kernel: conditional_diffusion_net.1
= control target key start
LH: loop header
LB: loop body
LE: loop exit
PB: predicated region body
PF: predicated region fallthrough
CT: control target
= control target key end

     0   :  { %18 = vsyncpa [#allocation3], 0  ;;  %s2260_s0 = inlined_call_operand.vmem [shape: f32[8,4], index: 0, kind: input, shape index: {}]   ;;  %s2261_s1 = inlined_call_operand.vmem [shape: bf16[4,768], index: 1, kind: input, shape index: {}]   ;;  %s2262_s2 = inlined_call_operand.vmem [shape: f32[1,768], index: 2, kind: input, shape index: {}]   ;;  %s2263_s3 = inlined_call_operand.hbm [shape: bf16[256,256], index: 3, kind: input, shape index: {}]   ;;  %s2264_s4 = inlined_call_operand.vmem [shape: f32[1,256], index: 4, kind: input, shape index: {}]   ;;  %s2265_s5 = inlined_call_operand.hbm [shape: bf16[256,256], index: 5, kind: input, shape index: {}]   ;;  %s2266_s6 = inlined_call_operand.vmem [shape: f32[1,256], index: 6, kind: input, shape index: {}]   ;;  %s2267_s7 = inlined_call_operand.hbm [shape: bf16[256,256], index: 7, kind: input, shape index: {}]   ;;  %s2268_s8 = inlined_call_operand.vmem [shape: f32[1,256], index: 8, kind: input, shape index: {}]   ;;  %s2269_s9 = inlined_call_operand.hbm [shape: bf16[256,256], index: 9, kind: input, shape index: {}]   ;;  %s2270_s10 = inlined_call_operand.vmem [shape: f32[1,256], index: 10, kind: input, shape index: {}]   ;;  %s2271_s11 = inlined_call_operand.hbm [shape: bf16[256,128], index: 11, kind: input, shape index: {}]   ;;  %s2272_s12 = inlined_call_operand.vmem [shape: f32[1,128], index: 12, kind: input, shape index: {}]   ;;  %s2273_s13 = inlined_call_operand.vmem [shape: f32[8,128], index: 13, kind: output, shape index: {}]  }
   0x1   :  { %19 = vsyncpa [#allocation5], 0 }
   0x2   :  { %20 = vsyncpa [#allocation8], 0  ;;  %s2023_s25 = smov [#allocation4]   ;;  %s2024_s27 = smov [#allocation7]  }
   0x3   :  { %s46_s26 = sshll.u32 %s2023_s25, 4  ;;  %s74_s28 = sshll.u32 %s2024_s27, 4  ;;  %s47_s26 = int_to_ptr.vmem [resolvable:$true] %s46_s26  ;;  %s2104_s28 = int_to_ptr.vmem [resolvable:$true] %s74_s28 }
   0x4   :  { %s1907_s14 = scalar_lea.hbm %s2265_s5, 4096 }
   0x5   :  { %p1908_p0 = scmp.ne.s32.totalorder %s2265_s5, %s1907_s14  ;;  %p1911_p1 = scmp.lt.u32.totalorder %s1907_s14, %s2265_s5 }
   0x7   :  { %p1913_p2 = pnand %p1911_p1, %p1908_p0 }
   0x9   :  { %1916 = shalt.err (!%p1913_p2)
}
   0xa   :  { %s1917_s19 = scalar_lea.vmem %s47_s26, 4096  ;;  %p1922_p4 = scmp.lt.s32.totalorder %s47_s26, %s47_s26 }
   0xb   :  { %p1918_p3 = scmp.ne.s32.totalorder %s47_s26, %s1917_s19  ;;  %p1923_p5 = scmp.lt.s32.totalorder %s1917_s19, %s1917_s19 }
   0xd   :  { %p1924_p6 = por %p1923_p5, %p1922_p4 }
   0xf   :  { %p1925_p7 = pnand %p1924_p6, %p1918_p3 }
  0x11   :  { %1928 = shalt.err (!%p1925_p7)
}
  0x12   :  { %s2025_s20 = smov 128   ;;  %s2026_s21 = smov 8  }
  0x13   :  { %52 = dma.hbm_to_vmem [thread:$0]  %s2265_s5, 4096, %s47_s26, [#allocation5], %s2025_s20, %s2025_s20, %s2026_s21  }
  0x14   :  { %s1929_s27 = scalar_lea.hbm %s2269_s9, 4096 }
  0x15   :  { %p1930_p8 = scmp.ne.s32.totalorder %s2269_s9, %s1929_s27  ;;  %p1933_p9 = scmp.lt.u32.totalorder %s1929_s27, %s2269_s9 }
  0x17   :  { %p1935_p10 = pnand %p1933_p9, %p1930_p8 }
  0x19   :  { %1938 = shalt.err (!%p1935_p10)
}
  0x1a   :  { %s1939_s16 = scalar_lea.vmem %s2104_s28, 4096  ;;  %p1944_p12 = scmp.lt.s32.totalorder %s2104_s28, %s2104_s28 }
  0x1b   :  { %p1940_p11 = scmp.ne.s32.totalorder %s2104_s28, %s1939_s16  ;;  %p1945_p13 = scmp.lt.s32.totalorder %s1939_s16, %s1939_s16 }
  0x1d   :  { %p1946_p0 = por %p1945_p13, %p1944_p12 }
  0x1f   :  { %p1947_p1 = pnand %p1946_p0, %p1940_p11 }
  0x21   :  { %1950 = shalt.err (!%p1947_p1)
}
  0x22   :  { %80 = dma.hbm_to_vmem [thread:$0]  %s2269_s9, 4096, %s2104_s28, [#allocation8], %s2025_s20, %s2025_s20, %s2026_s21  }
  0x23   :  { %s2027_s17 = smov [#allocation2]   ;;  %s2028_s19 = smov [#allocation6]  }
  0x24   :  { %s32_s18 = sshll.u32 %s2027_s17, 4  ;;  %s60_s22 = sshll.u32 %s2028_s19, 4  ;;  %s33_s18 = int_to_ptr.vmem [resolvable:$true] %s32_s18  ;;  %s2141_s22 = int_to_ptr.vmem [resolvable:$true] %s60_s22 }
  0x25   :  { %s1951_s25 = scalar_lea.hbm %s2263_s3, 4096 }
  0x26   :  { %p1952_p2 = scmp.ne.s32.totalorder %s2263_s3, %s1951_s25  ;;  %p1955_p3 = scmp.lt.u32.totalorder %s1951_s25, %s2263_s3 }
  0x28   :  { %p1957_p4 = pnand %p1955_p3, %p1952_p2 }
  0x2a   :  { %1960 = shalt.err (!%p1957_p4)
}
  0x2b   :  { %s1961_s9 = scalar_lea.vmem %s33_s18, 4096  ;;  %p1966_p6 = scmp.lt.s32.totalorder %s33_s18, %s33_s18 }
  0x2c   :  { %p1962_p5 = scmp.ne.s32.totalorder %s33_s18, %s1961_s9  ;;  %p1967_p7 = scmp.lt.s32.totalorder %s1961_s9, %s1961_s9 }
  0x2e   :  { %p1968_p8 = por %p1967_p7, %p1966_p6 }
  0x30   :  { %p1969_p9 = pnand %p1968_p8, %p1962_p5 }
  0x32   :  { %1972 = shalt.err (!%p1969_p9)
}
  0x33   :  { %38 = dma.hbm_to_vmem [thread:$0]  %s2263_s3, 4096, %s33_s18, [#allocation3], %s2025_s20, %s2025_s20, %s2026_s21  }
  0x34   :  { %s1973_s26 = scalar_lea.hbm %s2267_s7, 4096 }
  0x35   :  { %p1974_p10 = scmp.ne.s32.totalorder %s2267_s7, %s1973_s26  ;;  %p1977_p11 = scmp.lt.u32.totalorder %s1973_s26, %s2267_s7 }
  0x37   :  { %p1979_p12 = pnand %p1977_p11, %p1974_p10 }
  0x39   :  { %1982 = shalt.err (!%p1979_p12)
}
  0x3a   :  { %s1983_s25 = scalar_lea.vmem %s2141_s22, 4096  ;;  %p1988_p0 = scmp.lt.s32.totalorder %s2141_s22, %s2141_s22 }
  0x3b   :  { %p1984_p13 = scmp.ne.s32.totalorder %s2141_s22, %s1983_s25  ;;  %p1989_p1 = scmp.lt.s32.totalorder %s1983_s25, %s1983_s25 }
  0x3d   :  { %p1990_p2 = por %p1989_p1, %p1988_p0 }
  0x3f   :  { %p1991_p3 = pnand %p1990_p2, %p1984_p13 }
  0x41   :  { %1994 = shalt.err (!%p1991_p3)
}
  0x42   :  { %66 = dma.hbm_to_vmem [thread:$0]  %s2267_s7, 4096, %s2141_s22, [#allocation5], %s2025_s20, %s2025_s20, %s2026_s21  }
  0x43   :  { %s2029_s27 = smov [#allocation9]   ;;  %s1995_s9 = scalar_lea.hbm %s2271_s11, 2048 }
  0x44   :  { %s88_s29 = sshll.u32 %s2029_s27, 4  ;;  %p1996_p4 = scmp.ne.s32.totalorder %s2271_s11, %s1995_s9  ;;  %s89_s29 = int_to_ptr.vmem [resolvable:$true] %s88_s29 }
  0x45   :  { %p1999_p5 = scmp.lt.u32.totalorder %s1995_s9, %s2271_s11 }
  0x47   :  { %p2001_p6 = pnand %p1999_p5, %p1996_p4 }
  0x49   :  { %2004 = shalt.err (!%p2001_p6)
}
  0x4a   :  { %s2005_s26 = scalar_lea.vmem %s89_s29, 2048  ;;  %p2010_p8 = scmp.lt.s32.totalorder %s89_s29, %s89_s29 }
  0x4b   :  { %p2006_p7 = scmp.ne.s32.totalorder %s89_s29, %s2005_s26  ;;  %p2011_p9 = scmp.lt.s32.totalorder %s2005_s26, %s2005_s26 }
  0x4d   :  { %p2012_p10 = por %p2011_p9, %p2010_p8 }
  0x4f   :  { %p2013_p11 = pnand %p2012_p10, %p2006_p7 }
  0x51   :  { %2016 = shalt.err (!%p2013_p11)
}
  0x52   :  { %s2030_s7 = smov 64   ;;  %s2031_s20 = smov 4  }
  0x53   :  { %94 = dma.hbm_to_vmem [thread:$0]  %s2271_s11, 2048, %s89_s29, [#allocation8], %s2030_s7, %s2030_s7, %s2031_s20  }
  0x54   :  { %2017 = dma.done.wait [#allocation3], 4096  }
  0x55   :  { %2018 = vsyncadd [#allocation3], 4294963200 }
  0x56   :  { %2019 = dma.done.wait [#allocation5], 8192  }
  0x57   :  { %2020 = vsyncadd [#allocation5], 4294959104 }
  0x58   :  { %2021 = dma.done.wait [#allocation8], 6144  }
  0x59   :  { %2022 = vsyncadd [#allocation8], 4294961152  ;;  %v119_v0 = vlaneseq  ;;  %v2032_v1 = vmov 1983009808   ;;  %v2033_v3 = vmov 0   ;;  %v115_v7 = vld [vmem:[%s2261_s1] sm:$0xff] }
  0x5a   :  { %v153_v2 = vunpack.c.l.s4 %v2032_v1  ;;  %231 = vmatprep.mubr.bf16.mxu0 %v2033_v3  ;;  %vm180_vm0 = vcmask 1041408   ;;  %v113_v8 = vld [vmem:[%s2260_s0] sm:$0xff]  ;;  %v151_v9 = vcombine.high %v115_v7, %v115_v7  ;;  %v1513_v12 = vld.sshfl [vmem:[%s2261_s1 + $0x8] sm:$0x33 pattern:$0x76325410] }
  0x5b   :  { %v2190_v4 = vshrl.u32 %v119_v0, 7  ;;  %v1699_v11 = vld [vmem:[#allocation2 + $0x4] ss:$8 sps:$4 sm:$0xff]   ;;  %v1701_v13 = vld [vmem:[#allocation2] ss:$8 sps:$4 sm:$0xff]   ;;  %v114_v19 = vpack.c.bf16 %v113_v8, %v113_v8  ;;  %vm176_vm1 = vcmask 31744   ;;  %v175_v23 = vcombine.high %v1513_v12, %v1513_v12 }
  0x5c   :  { %v154_v5 = vunpack.c.0.s8 %v153_v2  ;;  %534 = vmatprep.subr.bf16.mxu1 %v1699_v11  ;;  %v1702_v17 = vld [vmem:[#allocation2 + $0x14] ss:$8 sps:$4 sm:$0xff]   ;;  %v1704_v18 = vld [vmem:[#allocation2 + $0x10] ss:$8 sps:$4 sm:$0xff]   ;;  %v1705_v21 = vld [vmem:[#allocation2 + $0x24] ss:$8 sps:$4 sm:$0xff]  }
  0x5d   :  { %535 = vmatpush1.bf16.msra.mxu1 %v1701_v13  ;;  %v1707_v24 = vld [vmem:[#allocation2 + $0x20] ss:$8 sps:$4 sm:$0xff]   ;;  %v1708_v25 = vld [vmem:[#allocation2 + $0x34] ss:$8 sps:$4 sm:$0xff]   ;;  %v1710_v26 = vld [vmem:[#allocation2 + $0x30] ss:$8 sps:$4 sm:$0xff]  }
  0x5e   :  { %v157_v6 = vsub.s32 %v154_v5, %v2190_v4  ;;  %536 = vmatprep.subr.bf16.mxu1 %v1702_v17  ;;  %v1711_v27 = vld [vmem:[#allocation2 + $0x44] ss:$8 sps:$4 sm:$0xff]   ;;  %v194_v28 = vsel %vm180_vm0, %v1513_v12, 0  ;;  %v1713_v29 = vld [vmem:[#allocation2 + $0x40] ss:$8 sps:$4 sm:$0xff]  }
  0x5f   :  { %v1714_v30 = vld [vmem:[#allocation2 + $0x54] ss:$8 sps:$4 sm:$0xff]   ;;  %v1740_v31 = vld [vmem:[#allocation4 + $0x4] ss:$8 sps:$4 sm:$0xff]   ;;  %v1716_v32 = vld [vmem:[#allocation2 + $0x50] ss:$8 sps:$4 sm:$0xff]  }
  0x60   :  { %v158_v10 = vrot.slane %v115_v7, %v157_v6  ;;  %v165_v14 = vrot.slane %v151_v9, %v157_v6  ;;  %v1717_v33 = vld [vmem:[#allocation2 + $0x64] ss:$8 sps:$4 sm:$0xff]   ;;  %v1719_v34 = vld [vmem:[#allocation2 + $0x60] ss:$8 sps:$4 sm:$0xff]   ;;  %v1746_v36 = vld [vmem:[#allocation4 + $0x14] ss:$8 sps:$4 sm:$0xff]  }
  0x61   :  { %537 = vmatpush1.bf16.msra.mxu1 %v1704_v18  ;;  %v1738_v35 = vld [vmem:[#allocation4] ss:$8 sps:$4 sm:$0xff]   ;;  %v1720_v37 = vld [vmem:[#allocation2 + $0x74] ss:$8 sps:$4 sm:$0xff]   ;;  %v1744_v38 = vld [vmem:[#allocation4 + $0x10] ss:$8 sps:$4 sm:$0xff]  }
  0x62   :  { %v166_v15 = vcombine.high %v158_v10, %v158_v10  ;;  %v182_v16 = vsel %vm180_vm0, %v158_v10, 0  ;;  %v167_v20 = vcombine.high %v165_v14, %v165_v14  ;;  %v188_v22 = vsel %vm180_vm0, %v165_v14, 0  ;;  %538 = vmatprep.subr.bf16.mxu1 %v1705_v21  ;;  %v1722_v39 = vld [vmem:[#allocation2 + $0x70] ss:$8 sps:$4 sm:$0xff]   ;;  %v1723_v40 = vld [vmem:[#allocation2 + $0x84] ss:$8 sps:$4 sm:$0xff]  }
  0x63   :  { %v1725_v41 = vld [vmem:[#allocation2 + $0x80] ss:$8 sps:$4 sm:$0xff]   ;;  %v1726_v42 = vld [vmem:[#allocation2 + $0x94] ss:$8 sps:$4 sm:$0xff]   ;;  %v1728_v43 = vld [vmem:[#allocation2 + $0x90] ss:$8 sps:$4 sm:$0xff]  }
  0x64   :  { %1514 = vmatprep.subr.msk.bf16.mxu0 %vm180_vm0, %v166_v15  ;;  %v1729_v44 = vld [vmem:[#allocation2 + $0xa4] ss:$8 sps:$4 sm:$0xff]   ;;  %v1731_v45 = vld [vmem:[#allocation2 + $0xa0] ss:$8 sps:$4 sm:$0xff]   ;;  %v1732_v46 = vld [vmem:[#allocation2 + $0xb4] ss:$8 sps:$4 sm:$0xff]  }
  0x65   :  { %200 = vmatpush1.bf16.msra.mxu0 %v182_v16  ;;  %539 = vmatpush1.bf16.msra.mxu1 %v1707_v24  ;;  %v1734_v47 = vld [vmem:[#allocation2 + $0xb0] ss:$8 sps:$4 sm:$0xff]   ;;  %v1735_v48 = vld [vmem:[#allocation2 + $0xc4] ss:$8 sps:$4 sm:$0xff]   ;;  %v1737_v49 = vld [vmem:[#allocation2 + $0xc0] ss:$8 sps:$4 sm:$0xff]  }
  0x66   :  { %1516 = vmatprep.subr.msk.bf16.mxu0 %vm180_vm0, %v167_v20  ;;  %540 = vmatprep.subr.bf16.mxu1 %v1708_v25  ;;  %v1741_v50 = vld [vmem:[#allocation2 + $0xd4] ss:$8 sps:$4 sm:$0xff]   ;;  %v1743_v51 = vld [vmem:[#allocation2 + $0xd0] ss:$8 sps:$4 sm:$0xff]   ;;  %v1747_v52 = vld [vmem:[#allocation2 + $0xe4] ss:$8 sps:$4 sm:$0xff]  }
  0x67   :  { %v1749_v53 = vld [vmem:[#allocation2 + $0xe0] ss:$8 sps:$4 sm:$0xff]   ;;  %v1752_v54 = vld [vmem:[#allocation4 + $0x24] ss:$8 sps:$4 sm:$0xff]   ;;  %v1753_v56 = vld [vmem:[#allocation2 + $0xf4] ss:$8 sps:$4 sm:$0xff]  }
  0x68   :  { %1515 = vmatmul.mubr.msk.bf16.vlgmr.msra.gmra.mrb[0].mxu0 %vm176_vm1, %v114_v19  ;;  %v1750_v55 = vld [vmem:[#allocation4 + $0x20] ss:$8 sps:$4 sm:$0xff]   ;;  %v1755_v57 = vld [vmem:[#allocation2 + $0xf0] ss:$8 sps:$4 sm:$0xff]   ;;  %v1758_v59 = vld [vmem:[#allocation4 + $0x34] ss:$8 sps:$4 sm:$0xff]  }
  0x69   :  { %241 = vmatpush1.bf16.msra.mxu0 %v188_v22  ;;  %272 = vmatprep.mubr.bf16.mxu0 %v2033_v3  ;;  %v1756_v58 = vld [vmem:[#allocation4 + $0x30] ss:$8 sps:$4 sm:$0xff]   ;;  %v1761_v60 = vld [vmem:[#allocation6 + $0x4] ss:$8 sps:$4 sm:$0xff]   ;;  %v1762_v61 = vld [vmem:[#allocation4 + $0x40] ss:$8 sps:$4 sm:$0xff]  }
  0x6a   :  { %1518 = vmatprep.subr.msk.bf16.mxu0 %vm180_vm0, %v175_v23  ;;  %541 = vmatpush1.bf16.msra.mxu1 %v1710_v26  ;;  %v1764_v62 = vld [vmem:[#allocation4 + $0x44] ss:$8 sps:$4 sm:$0xff]   ;;  %v1768_v63 = vld [vmem:[#allocation4 + $0x50] ss:$8 sps:$4 sm:$0xff]   ;;  %v1770_v0 = vld [vmem:[#allocation4 + $0x54] ss:$8 sps:$4 sm:$0xff]  }
  0x6b   :  { %542 = vmatprep.subr.bf16.mxu1 %v1711_v27  ;;  %v1774_v1 = vld [vmem:[#allocation4 + $0x60] ss:$8 sps:$4 sm:$0xff]   ;;  %v1776_v2 = vld [vmem:[#allocation4 + $0x64] ss:$8 sps:$4 sm:$0xff]   ;;  %v1782_v5 = vld [vmem:[#allocation4 + $0x74] ss:$8 sps:$4 sm:$0xff]  }
  0x6c   :  { %v1786_v6 = vld [vmem:[#allocation4 + $0x80] ss:$8 sps:$4 sm:$0xff]   ;;  %v1788_v7 = vld [vmem:[#allocation4 + $0x84] ss:$8 sps:$4 sm:$0xff]   ;;  %v1792_v8 = vld [vmem:[#allocation4 + $0x90] ss:$8 sps:$4 sm:$0xff]  }
  0x6d   :  { %v1794_v9 = vld [vmem:[#allocation4 + $0x94] ss:$8 sps:$4 sm:$0xff]   ;;  %v1798_v10 = vld [vmem:[#allocation4 + $0xa0] ss:$8 sps:$4 sm:$0xff]   ;;  %v1800_v11 = vld [vmem:[#allocation4 + $0xa4] ss:$8 sps:$4 sm:$0xff]  }
  0x6e   :  { %543 = vmatpush1.bf16.msra.mxu1 %v1713_v29  ;;  %v1804_v12 = vld [vmem:[#allocation4 + $0xb0] ss:$8 sps:$4 sm:$0xff]   ;;  %v1806_v13 = vld [vmem:[#allocation4 + $0xb4] ss:$8 sps:$4 sm:$0xff]   ;;  %v1810_v14 = vld [vmem:[#allocation4 + $0xc0] ss:$8 sps:$4 sm:$0xff]  }
  0x6f   :  { %544 = vmatprep.subr.bf16.mxu1 %v1714_v30  ;;  %v1812_v15 = vld [vmem:[#allocation4 + $0xc4] ss:$8 sps:$4 sm:$0xff]   ;;  %v1816_v16 = vld [vmem:[#allocation4 + $0xd0] ss:$8 sps:$4 sm:$0xff]   ;;  %v1818_v17 = vld [vmem:[#allocation4 + $0xd4] ss:$8 sps:$4 sm:$0xff]  }
  0x70   :  { %1517 = vmatmul.mubr.msk.bf16.vlgmr.msra.gmra.mrb[4].mxu0 %vm176_vm1, %v114_v19  ;;  %v1822_v18 = vld [vmem:[#allocation4 + $0xe0] ss:$8 sps:$4 sm:$0xff]   ;;  %v1828_v20 = vld [vmem:[#allocation4 + $0xf0] ss:$8 sps:$4 sm:$0xff]   ;;  %v1830_v21 = vld [vmem:[#allocation4 + $0xf4] ss:$8 sps:$4 sm:$0xff]  }
  0x71   :  { %282 = vmatpush1.bf16.msra.mxu0 %v194_v28  ;;  %313 = vmatprep.mubr.bf16.mxu0 %v2033_v3  ;;  %v1780_v3 = vld [vmem:[#allocation4 + $0x70] ss:$8 sps:$4 sm:$0xff]   ;;  %v2212_v22 = vsub.s32 0, %v2190_v4  ;;  %v2217_v23 = vld [vmem:[%s2262_s2] sm:$0x3f]  ;;  %v2220_v24 = vsub.s32 1, %v2190_v4 }
  0x72   :  { %783 = vmatprep.subr.bf16.mxu0 %v1740_v31  ;;  %545 = vmatpush1.bf16.msra.mxu1 %v1716_v32  ;;  %v129_v30 = vsub.s32 2, %v2190_v4 }
  0x73   :  { %546 = vmatprep.subr.bf16.mxu1 %v1717_v33  ;;  %v122_v25 = vrot.slane %v2217_v23, %v2212_v22  ;;  %v126_v26 = vrot.slane %v2217_v23, %v2220_v24  ;;  %v133_v33 = vsub.s32 3, %v2190_v4 }
  0x76   :  { %547 = vmatpush1.bf16.msra.mxu1 %v1719_v34 }
  0x77   :  { %548 = vmatprep.subr.bf16.mxu1 %v1720_v37  ;;  %v130_v37 = vrot.slane %v2217_v23, %v129_v30  ;;  %v1837_v30 = vld [vmem:[#allocation6 + $0xe0] ss:$8 sps:$4 sm:$0xff]  }
  0x78   :  { %1519 = vmatmul.mubr.msk.bf16.vlgmr.msra.gmra.mrb[8].mxu0 %vm176_vm1, %v114_v19  ;;  %v1824_v19 = vld [vmem:[#allocation4 + $0xe4] ss:$8 sps:$4 sm:$0xff]  }
  0x79   :  { %784 = vmatpush1.bf16.msra.mxu0 %v1738_v35 }
  0x7a   :  { %785 = vmatprep.subr.bf16.mxu0 %v1746_v36  ;;  %549 = vmatpush1.bf16.msra.mxu1 %v1722_v39  ;;  %v1759_v39 = vld [vmem:[#allocation6] ss:$8 sps:$4 sm:$0xff]  }
  0x7b   :  { %550 = vmatprep.subr.bf16.mxu1 %v1723_v40  ;;  %v134_v40 = vrot.slane %v2217_v23, %v133_v33  ;;  %v1840_v33 = vld [vmem:[#allocation6 + $0xf0] ss:$8 sps:$4 sm:$0xff]  }
  0x7d   :  { %786 = vmatpush1.bf16.msra.mxu0 %v1744_v38 }
  0x7e   :  { %551 = vmatpush1.bf16.msra.mxu1 %v1725_v41  ;;  %787 = vmatprep.subr.bf16.mxu0 %v1752_v54 }
  0x7f   :  { %552 = vmatprep.subr.bf16.mxu1 %v1726_v42  ;;  %v1767_v42 = vld [vmem:[#allocation6 + $0x14] ss:$8 sps:$4 sm:$0xff]  }
  0x81   :  { %788 = vmatpush1.bf16.msra.mxu0 %v1750_v55  ;;  %v1771_v55 = vld [vmem:[#allocation6 + $0x20] ss:$8 sps:$4 sm:$0xff]  }
  0x82   :  { %553 = vmatpush1.bf16.msra.mxu1 %v1728_v43  ;;  %789 = vmatprep.subr.bf16.mxu0 %v1758_v59 }
  0x83   :  { %554 = vmatprep.subr.bf16.mxu1 %v1729_v44 }
  0x85   :  { %790 = vmatpush1.bf16.msra.mxu0 %v1756_v58  ;;  %v1779_v58 = vld [vmem:[#allocation6 + $0x34] ss:$8 sps:$4 sm:$0xff]  }
  0x86   :  { %555 = vmatpush1.bf16.msra.mxu1 %v1731_v45  ;;  %791 = vmatprep.subr.bf16.mxu0 %v1764_v62 }
  0x87   :  { %556 = vmatprep.subr.bf16.mxu1 %v1732_v46  ;;  %v1765_v46 = vld [vmem:[#allocation6 + $0x10] ss:$8 sps:$4 sm:$0xff]  }
  0x89   :  { %792 = vmatpush1.bf16.msra.mxu0 %v1762_v61  ;;  %v1777_v61 = vld [vmem:[#allocation6 + $0x30] ss:$8 sps:$4 sm:$0xff]  }
  0x8a   :  { %557 = vmatpush1.bf16.msra.mxu1 %v1734_v47  ;;  %793 = vmatprep.subr.bf16.mxu0 %v1770_v0  ;;  %v1785_v0 = vld [vmem:[#allocation6 + $0x44] ss:$8 sps:$4 sm:$0xff]  }
  0x8b   :  { %558 = vmatprep.subr.bf16.mxu1 %v1735_v48 }
  0x8d   :  { %794 = vmatpush1.bf16.msra.mxu0 %v1768_v63 }
  0x8e   :  { %559 = vmatpush1.bf16.msra.mxu1 %v1737_v49  ;;  %795 = vmatprep.subr.bf16.mxu0 %v1776_v2  ;;  %v141_v49 = vsub.s32 5, %v2190_v4 }
  0x8f   :  { %560 = vmatprep.subr.bf16.mxu1 %v1741_v50  ;;  %v1773_v50 = vld [vmem:[#allocation6 + $0x24] ss:$8 sps:$4 sm:$0xff]  }
  0x91   :  { %796 = vmatpush1.bf16.msra.mxu0 %v1774_v1 }
  0x92   :  { %561 = vmatpush1.bf16.msra.mxu1 %v1743_v51  ;;  %797 = vmatprep.subr.bf16.mxu0 %v1782_v5 }
  0x93   :  { %562 = vmatprep.subr.bf16.mxu1 %v1747_v52 }
  0x95   :  { %798 = vmatpush1.bf16.msra.mxu0 %v1780_v3  ;;  %v1783_v3 = vld [vmem:[#allocation6 + $0x40] ss:$8 sps:$4 sm:$0xff]  }
  0x96   :  { %563 = vmatpush1.bf16.msra.mxu1 %v1749_v53  ;;  %799 = vmatprep.subr.bf16.mxu0 %v1788_v7  ;;  %v1789_v7 = vld [vmem:[#allocation6 + $0x50] ss:$8 sps:$4 sm:$0xff]  }
  0x97   :  { %564 = vmatprep.subr.bf16.mxu1 %v1753_v56 }
  0x99   :  { %800 = vmatpush1.bf16.msra.mxu0 %v1786_v6  ;;  %v1791_v6 = vld [vmem:[#allocation6 + $0x54] ss:$8 sps:$4 sm:$0xff]  }
  0x9a   :  { %565 = vmatpush1.bf16.msra.mxu1 %v1755_v57  ;;  %801 = vmatprep.subr.bf16.mxu0 %v1794_v9  ;;  %v142_v57 = vrot.slane %v2217_v23, %v141_v49  ;;  %v1795_v9 = vld [vmem:[#allocation6 + $0x60] ss:$8 sps:$4 sm:$0xff]   ;;  %v1864_v49 = vld [vmem:[#allocation7 + $0x70] ss:$8 sps:$4 sm:$0xff]  }
  0x9b   :  { %1032 = vmatprep.subr.bf16.mxu1 %v1761_v60 }
  0x9d   :  { %802 = vmatpush1.bf16.msra.mxu0 %v1792_v8  ;;  %v1797_v8 = vld [vmem:[#allocation6 + $0x64] ss:$8 sps:$4 sm:$0xff]  }
  0x9e   :  { %803 = vmatprep.subr.bf16.mxu0 %v1800_v11  ;;  %v1801_v11 = vld [vmem:[#allocation6 + $0x70] ss:$8 sps:$4 sm:$0xff]  }
  0xa1   :  { %804 = vmatpush1.bf16.msra.mxu0 %v1798_v10  ;;  %v1803_v10 = vld [vmem:[#allocation6 + $0x74] ss:$8 sps:$4 sm:$0xff]  }
  0xa2   :  { %805 = vmatprep.subr.bf16.mxu0 %v1806_v13  ;;  %v1807_v13 = vld [vmem:[#allocation6 + $0x80] ss:$8 sps:$4 sm:$0xff]  }
  0xa5   :  { %806 = vmatpush1.bf16.msra.mxu0 %v1804_v12  ;;  %v1809_v12 = vld [vmem:[#allocation6 + $0x84] ss:$8 sps:$4 sm:$0xff]  }
  0xa6   :  { %807 = vmatprep.subr.bf16.mxu0 %v1812_v15  ;;  %v1813_v15 = vld [vmem:[#allocation6 + $0x90] ss:$8 sps:$4 sm:$0xff]  }
  0xa9   :  { %808 = vmatpush1.bf16.msra.mxu0 %v1810_v14  ;;  %v1815_v14 = vld [vmem:[#allocation6 + $0x94] ss:$8 sps:$4 sm:$0xff]  }
  0xaa   :  { %809 = vmatprep.subr.bf16.mxu0 %v1818_v17  ;;  %v1819_v17 = vld [vmem:[#allocation6 + $0xa0] ss:$8 sps:$4 sm:$0xff]  }
  0xad   :  { %810 = vmatpush1.bf16.msra.mxu0 %v1816_v16  ;;  %v1821_v16 = vld [vmem:[#allocation6 + $0xa4] ss:$8 sps:$4 sm:$0xff]  }
  0xae   :  { %811 = vmatprep.subr.bf16.mxu0 %v1824_v19  ;;  %v1825_v19 = vld [vmem:[#allocation6 + $0xb0] ss:$8 sps:$4 sm:$0xff]  }
  0xb1   :  { %812 = vmatpush1.bf16.msra.mxu0 %v1822_v18  ;;  %v1827_v18 = vld [vmem:[#allocation6 + $0xb4] ss:$8 sps:$4 sm:$0xff]  }
  0xb2   :  { %813 = vmatprep.subr.bf16.mxu0 %v1830_v21  ;;  %v1831_v21 = vld [vmem:[#allocation6 + $0xc0] ss:$8 sps:$4 sm:$0xff]  }
  0xb5   :  { %814 = vmatpush1.bf16.msra.mxu0 %v1828_v20  ;;  %v1833_v20 = vld [vmem:[#allocation6 + $0xc4] ss:$8 sps:$4 sm:$0xff]  }
 0x13b   :  { %v233_v27 = vpop.f32.mrb[0].mxu0 }
 0x13c   :  { %v234_v28 = vadd.f32 %v233_v27, %v122_v25  ;;  %v235_v29 = vpop.f32.mrb[1].mxu0  ;;  %v137_v25 = vsub.s32 4, %v2190_v4  ;;  %v1834_v27 = vld [vmem:[#allocation6 + $0xd0] ss:$8 sps:$4 sm:$0xff]   ;;  %v1843_v4 = vld [vmem:[#allocation7] ss:$8 sps:$4 sm:$0xff]  }
 0x13d   :  { %v236_v31 = vadd.f32 %v235_v29, %v126_v26  ;;  %v237_v32 = vpop.f32.mrb[2].mxu0  ;;  %v1836_v26 = vld [vmem:[#allocation6 + $0xd4] ss:$8 sps:$4 sm:$0xff]   ;;  %v1839_v29 = vld [vmem:[#allocation6 + $0xe4] ss:$8 sps:$4 sm:$0xff]  }
 0x13e   :  { %v322_v34 = vmax.f32 %v234_v28, 0.0  ;;  %v238_v35 = vpop.f32.mrb[3].mxu0  ;;  %v138_v28 = vrot.slane %v2217_v23, %v137_v25  ;;  %v1842_v32 = vld [vmem:[#allocation6 + $0xf4] ss:$8 sps:$4 sm:$0xff]   ;;  %v1846_v23 = vld [vmem:[#allocation7 + $0x10] ss:$8 sps:$4 sm:$0xff]  }
 0x13f   :  { %v323_v36 = vmax.f32 %v236_v31, 0.0 }
 0x140   :  { %v328_v41 = vpack.c.bf16 %v322_v34, %v322_v34 }
 0x141   :  { %v329_v38 = vpack.c.bf16 %v323_v36, %v323_v36  ;;  %v1845_v36 = vld [vmem:[#allocation7 + $0x4] ss:$8 sps:$4 sm:$0xff]  }
 0x142   :  { %1285 = vmatprep.subr.bf16.mxu0 %v1845_v36 }
 0x143   :  { %566 = vmatprep.mubr.bf16.mxu1 %v329_v38  ;;  %v274_v43 = vpop.f32.mrb[4].mxu0  ;;  %v1851_v38 = vld [vmem:[#allocation7 + $0x24] ss:$8 sps:$4 sm:$0xff]  }
 0x144   :  { %567 = vmatmul.mubr.bf16.vlgmr.msra.gmra.mrb[0].mxu1 %v328_v41  ;;  %v275_v44 = vadd.f32 %v274_v43, %v130_v37  ;;  %v276_v45 = vpop.f32.mrb[5].mxu0  ;;  %v1848_v37 = vld [vmem:[#allocation7 + $0x14] ss:$8 sps:$4 sm:$0xff]   ;;  %v1852_v41 = vld [vmem:[#allocation7 + $0x30] ss:$8 sps:$4 sm:$0xff]  }
 0x145   :  { %1033 = vmatpush1.bf16.msra.mxu1 %v1759_v39  ;;  %v277_v47 = vadd.f32 %v276_v45, %v134_v40  ;;  %v278_v48 = vpop.f32.mrb[6].mxu0  ;;  %v1849_v39 = vld [vmem:[#allocation7 + $0x20] ss:$8 sps:$4 sm:$0xff]   ;;  %v1854_v40 = vld [vmem:[#allocation7 + $0x34] ss:$8 sps:$4 sm:$0xff]  }
 0x146   :  { %1034 = vmatprep.subr.bf16.mxu1 %v1767_v42  ;;  %v324_v51 = vmax.f32 %v275_v44, 0.0  ;;  %v279_v52 = vpop.f32.mrb[7].mxu0  ;;  %v1857_v42 = vld [vmem:[#allocation7 + $0x44] ss:$8 sps:$4 sm:$0xff]   ;;  %v1855_v43 = vld [vmem:[#allocation7 + $0x40] ss:$8 sps:$4 sm:$0xff]  }
 0x147   :  { %v325_v53 = vmax.f32 %v277_v47, 0.0  ;;  %v1860_v44 = vld [vmem:[#allocation7 + $0x54] ss:$8 sps:$4 sm:$0xff]   ;;  %v1858_v45 = vld [vmem:[#allocation7 + $0x50] ss:$8 sps:$4 sm:$0xff]  }
 0x148   :  { %v577_v54 = vpack.c.bf16 %v324_v51, %v324_v51  ;;  %v1861_v47 = vld [vmem:[#allocation7 + $0x60] ss:$8 sps:$4 sm:$0xff]   ;;  %v1866_v48 = vld [vmem:[#allocation7 + $0x74] ss:$8 sps:$4 sm:$0xff]  }
 0x149   :  { %1035 = vmatpush1.bf16.msra.mxu1 %v1765_v46  ;;  %v578_v56 = vpack.c.bf16 %v325_v53, %v325_v53  ;;  %v1863_v46 = vld [vmem:[#allocation7 + $0x64] ss:$8 sps:$4 sm:$0xff]   ;;  %v1867_v51 = vld [vmem:[#allocation7 + $0x80] ss:$8 sps:$4 sm:$0xff]   ;;  %v1872_v52 = vld [vmem:[#allocation7 + $0x94] ss:$8 sps:$4 sm:$0xff]  }
 0x14a   :  { %1036 = vmatprep.subr.bf16.mxu1 %v1773_v50  ;;  %v1869_v50 = vld [vmem:[#allocation7 + $0x84] ss:$8 sps:$4 sm:$0xff]   ;;  %v1870_v53 = vld [vmem:[#allocation7 + $0x90] ss:$8 sps:$4 sm:$0xff]  }
 0x14b   :  { %815 = vmatprep.mubr.bf16.mxu0 %v578_v56  ;;  %v315_v59 = vpop.f32.mrb[8].mxu0  ;;  %v1878_v56 = vld [vmem:[#allocation7 + $0xb4] ss:$8 sps:$4 sm:$0xff]  }
 0x14c   :  { %816 = vmatmul.mubr.bf16.vlgmr.msra.gmra.mrb[12].mxu0 %v577_v54  ;;  %v317_v60 = vpop.f32.mrb[9].mxu0  ;;  %v316_v31 = vadd.f32 %v315_v59, %v138_v28  ;;  %v1875_v54 = vld [vmem:[#allocation7 + $0xa4] ss:$8 sps:$4 sm:$0xff]   ;;  %v1879_v59 = vld [vmem:[#allocation7 + $0xc0] ss:$8 sps:$4 sm:$0xff]  }
 0x14d   :  { %1037 = vmatpush1.bf16.msra.mxu1 %v1771_v55  ;;  %v318_v62 = vadd.f32 %v317_v60, %v142_v57  ;;  %v319_v63 = vpop.f32.mrb[10].mxu0  ;;  %1286 = vmatpush1.bf16.msra.mxu0 %v1843_v4  ;;  %v1873_v55 = vld [vmem:[#allocation7 + $0xa0] ss:$8 sps:$4 sm:$0xff]   ;;  %v1876_v57 = vld [vmem:[#allocation7 + $0xb0] ss:$8 sps:$4 sm:$0xff]  }
 0x14e   :  { %1038 = vmatprep.subr.bf16.mxu1 %v1779_v58  ;;  %v320_v1 = vpop.f32.mrb[11].mxu0  ;;  %v326_v34 = vmax.f32 %v316_v31, 0.0  ;;  %1287 = vmatprep.subr.bf16.mxu0 %v1848_v37  ;;  %v1881_v58 = vld [vmem:[#allocation7 + $0xc4] ss:$8 sps:$4 sm:$0xff]   ;;  %v1884_v60 = vld [vmem:[#allocation7 + $0xd4] ss:$8 sps:$4 sm:$0xff]  }
 0x14f   :  { %v327_v2 = vmax.f32 %v318_v62, 0.0  ;;  %v1887_v62 = vld [vmem:[#allocation7 + $0xe4] ss:$8 sps:$4 sm:$0xff]   ;;  %v1885_v63 = vld [vmem:[#allocation7 + $0xe0] ss:$8 sps:$4 sm:$0xff]  }
 0x150   :  { %v826_v35 = vpack.c.bf16 %v326_v34, %v326_v34  ;;  %v1888_v1 = vld [vmem:[#allocation7 + $0xf0] ss:$8 sps:$4 sm:$0xff]   ;;  %v860_v28 = vld [vmem:[%s2268_s8] sm:$0x3] }
 0x151   :  { %1039 = vmatpush1.bf16.msra.mxu1 %v1777_v61  ;;  %v827_v5 = vpack.c.bf16 %v327_v2, %v327_v2  ;;  %1288 = vmatpush1.bf16.msra.mxu0 %v1846_v23  ;;  %v1882_v61 = vld [vmem:[#allocation7 + $0xd0] ss:$8 sps:$4 sm:$0xff]   ;;  %v1891_v2 = vld [vmem:[#allocation9 + $0x40] sm:$0xff]   ;;  %v869_v34 = vrot.slane %v860_v28, %v2220_v24 }
 0x152   :  { %1040 = vmatprep.subr.bf16.mxu1 %v1785_v0  ;;  %1289 = vmatprep.subr.bf16.mxu0 %v1851_v38  ;;  %v1890_v0 = vld [vmem:[#allocation7 + $0xf4] ss:$8 sps:$4 sm:$0xff]  }
 0x153   :  { %1064 = vmatprep.mubr.bf16.mxu1 %v827_v5  ;;  %v1893_v5 = vld [vmem:[#allocation9 + $0x48] sm:$0xff]  }
 0x155   :  { %1041 = vmatpush1.bf16.msra.mxu1 %v1783_v3  ;;  %1290 = vmatpush1.bf16.msra.mxu0 %v1849_v39  ;;  %v1892_v3 = vld [vmem:[#allocation9] sm:$0xff]  }
 0x156   :  { %1042 = vmatprep.subr.bf16.mxu1 %v1791_v6  ;;  %1291 = vmatprep.subr.bf16.mxu0 %v1854_v40  ;;  %v1894_v6 = vld [vmem:[#allocation9 + $0x8] sm:$0xff]  }
 0x159   :  { %1043 = vmatpush1.bf16.msra.mxu1 %v1789_v7  ;;  %1292 = vmatpush1.bf16.msra.mxu0 %v1852_v41  ;;  %v1895_v7 = vld [vmem:[#allocation9 + $0x50] sm:$0xff]  }
 0x15a   :  { %1044 = vmatprep.subr.bf16.mxu1 %v1797_v8  ;;  %1293 = vmatprep.subr.bf16.mxu0 %v1857_v42  ;;  %v1896_v8 = vld [vmem:[#allocation9 + $0x10] sm:$0xff]  }
 0x15d   :  { %1045 = vmatpush1.bf16.msra.mxu1 %v1795_v9  ;;  %1294 = vmatpush1.bf16.msra.mxu0 %v1855_v43  ;;  %v1897_v9 = vld [vmem:[#allocation9 + $0x58] sm:$0xff]  }
 0x15e   :  { %1046 = vmatprep.subr.bf16.mxu1 %v1803_v10  ;;  %1295 = vmatprep.subr.bf16.mxu0 %v1860_v44  ;;  %v1898_v10 = vld [vmem:[#allocation9 + $0x18] sm:$0xff]  }
 0x161   :  { %1047 = vmatpush1.bf16.msra.mxu1 %v1801_v11  ;;  %1296 = vmatpush1.bf16.msra.mxu0 %v1858_v45  ;;  %v1899_v11 = vld [vmem:[#allocation9 + $0x60] sm:$0xff]  }
 0x162   :  { %1048 = vmatprep.subr.bf16.mxu1 %v1809_v12  ;;  %1297 = vmatprep.subr.bf16.mxu0 %v1863_v46  ;;  %v1900_v12 = vld [vmem:[#allocation9 + $0x20] sm:$0xff]  }
 0x165   :  { %1049 = vmatpush1.bf16.msra.mxu1 %v1807_v13  ;;  %1298 = vmatpush1.bf16.msra.mxu0 %v1861_v47  ;;  %v1901_v13 = vld [vmem:[#allocation9 + $0x68] sm:$0xff]  }
 0x166   :  { %1050 = vmatprep.subr.bf16.mxu1 %v1815_v14  ;;  %1299 = vmatprep.subr.bf16.mxu0 %v1866_v48  ;;  %v1902_v14 = vld [vmem:[#allocation9 + $0x28] sm:$0xff]  }
 0x169   :  { %1051 = vmatpush1.bf16.msra.mxu1 %v1813_v15  ;;  %1300 = vmatpush1.bf16.msra.mxu0 %v1864_v49 }
 0x16a   :  { %1052 = vmatprep.subr.bf16.mxu1 %v1821_v16  ;;  %1301 = vmatprep.subr.bf16.mxu0 %v1869_v50 }
 0x16d   :  { %1053 = vmatpush1.bf16.msra.mxu1 %v1819_v17  ;;  %1302 = vmatpush1.bf16.msra.mxu0 %v1867_v51 }
 0x16e   :  { %1054 = vmatprep.subr.bf16.mxu1 %v1827_v18  ;;  %1303 = vmatprep.subr.bf16.mxu0 %v1872_v52 }
 0x171   :  { %1055 = vmatpush1.bf16.msra.mxu1 %v1825_v19  ;;  %1304 = vmatpush1.bf16.msra.mxu0 %v1870_v53 }
 0x172   :  { %1056 = vmatprep.subr.bf16.mxu1 %v1833_v20  ;;  %1305 = vmatprep.subr.bf16.mxu0 %v1875_v54 }
 0x175   :  { %1057 = vmatpush1.bf16.msra.mxu1 %v1831_v21  ;;  %1306 = vmatpush1.bf16.msra.mxu0 %v1873_v55  ;;  %v1903_v55 = vld [vmem:[#allocation9 + $0x70] sm:$0xff]  }
 0x176   :  { %1058 = vmatprep.subr.bf16.mxu1 %v1836_v26  ;;  %1307 = vmatprep.subr.bf16.mxu0 %v1878_v56  ;;  %v362_v26 = vld [vmem:[%s2264_s4] sm:$0x3]  ;;  %v1904_v56 = vld [vmem:[#allocation9 + $0x30] sm:$0xff]  }
 0x179   :  { %1059 = vmatpush1.bf16.msra.mxu1 %v1834_v27  ;;  %1308 = vmatpush1.bf16.msra.mxu0 %v1876_v57  ;;  %v611_v27 = vld [vmem:[%s2266_s6] sm:$0x3]  ;;  %v1905_v57 = vld [vmem:[#allocation9 + $0x78] sm:$0xff]  }
 0x17a   :  { %1060 = vmatprep.subr.bf16.mxu1 %v1839_v29  ;;  %1309 = vmatprep.subr.bf16.mxu0 %v1881_v58  ;;  %v367_v29 = vrot.slane %v362_v26, %v2212_v22  ;;  %v616_v31 = vrot.slane %v611_v27, %v2212_v22  ;;  %v1906_v58 = vld [vmem:[#allocation9 + $0x38] sm:$0xff]  }
 0x17d   :  { %1061 = vmatpush1.bf16.msra.mxu1 %v1837_v30  ;;  %1310 = vmatpush1.bf16.msra.mxu0 %v1879_v59  ;;  %v371_v30 = vrot.slane %v362_v26, %v2220_v24  ;;  %v1113_v59 = vld [vmem:[%s2270_s10] sm:$0x3] }
 0x17e   :  { %1062 = vmatprep.subr.bf16.mxu1 %v1842_v32  ;;  %1311 = vmatprep.subr.bf16.mxu0 %v1884_v60  ;;  %v865_v32 = vrot.slane %v860_v28, %v2212_v22  ;;  %v1118_v60 = vrot.slane %v1113_v59, %v2212_v22 }
 0x181   :  { %1063 = vmatpush1.bf16.msra.mxu1 %v1840_v33  ;;  %1312 = vmatpush1.bf16.msra.mxu0 %v1882_v61  ;;  %v620_v33 = vrot.slane %v611_v27, %v2220_v24  ;;  %v1122_v61 = vrot.slane %v1113_v59, %v2220_v24 }
 0x182   :  { %1313 = vmatprep.subr.bf16.mxu0 %v1887_v62  ;;  %1665 = vmatprep.subr.bf16.mxu1 %v1891_v2 }
 0x184   :  { %1065 = vmatmul.mubr.bf16.vlgmr.msra.gmra.mrb[4].mxu1 %v826_v35 }
 0x185   :  { %1314 = vmatpush1.bf16.msra.mxu0 %v1885_v63  ;;  %1666 = vmatpush3.bf16.msra.mxu1 %v1892_v3 }
 0x186   :  { %1315 = vmatprep.subr.bf16.mxu0 %v1890_v0  ;;  %1667 = vmatprep.subr.bf16.mxu1 %v1893_v5 }
 0x189   :  { %1316 = vmatpush1.bf16.msra.mxu0 %v1888_v1  ;;  %1668 = vmatpush3.bf16.msra.mxu1 %v1894_v6 }
 0x18a   :  { %1669 = vmatprep.subr.bf16.mxu1 %v1895_v7 }
 0x18d   :  { %1670 = vmatpush3.bf16.msra.mxu1 %v1896_v8 }
 0x18e   :  { %1671 = vmatprep.subr.bf16.mxu1 %v1897_v9 }
 0x191   :  { %1672 = vmatpush3.bf16.msra.mxu1 %v1898_v10  ;;  %v1648_v10 = vld [vmem:[%s2272_s12] ss:$0 sm:$0xff] }
 0x192   :  { %1673 = vmatprep.subr.bf16.mxu1 %v1899_v11 }
 0x195   :  { %1674 = vmatpush3.bf16.msra.mxu1 %v1900_v12 }
 0x196   :  { %1675 = vmatprep.subr.bf16.mxu1 %v1901_v13 }
 0x199   :  { %1676 = vmatpush3.bf16.msra.mxu1 %v1902_v14 }
 0x19a   :  { %1677 = vmatprep.subr.bf16.mxu1 %v1903_v55 }
 0x19d   :  { %1678 = vmatpush3.bf16.msra.mxu1 %v1904_v56 }
 0x19e   :  { %1679 = vmatprep.subr.bf16.mxu1 %v1905_v57 }
 0x1a1   :  { %1680 = vmatpush3.bf16.msra.mxu1 %v1906_v58 }
 0x217   :  { %v568_v15 = vpop.f32.mrb[0].mxu1 }
 0x218   :  { %v570_v16 = vpop.f32.mrb[1].mxu1  ;;  %v569_v35 = vadd.f32 %v568_v15, %v367_v29 }
 0x219   :  { %v572_v17 = vpop.f32.mrb[2].mxu1  ;;  %v571_v4 = vadd.f32 %v570_v16, %v371_v30 }
 0x21a   :  { %v573_v18 = vpop.f32.mrb[3].mxu1  ;;  %v575_v42 = vmax.f32 %v569_v35, 0.0 }
 0x21b   :  { %v576_v45 = vmax.f32 %v571_v4, 0.0 }
 0x21f   :  { %v817_v19 = vpop.f32.mrb[12].mxu0 }
 0x220   :  { %v819_v20 = vpop.f32.mrb[13].mxu0  ;;  %v818_v37 = vadd.f32 %v817_v19, %v616_v31 }
 0x221   :  { %v821_v21 = vpop.f32.mrb[14].mxu0  ;;  %v820_v39 = vadd.f32 %v819_v20, %v620_v33 }
 0x222   :  { %v822_v25 = vpop.f32.mrb[15].mxu0  ;;  %v824_v47 = vmax.f32 %v818_v37, 0.0 }
 0x223   :  { %v825_v49 = vmax.f32 %v820_v39, 0.0 }
 0x257   :  { %v1066_v36 = vpop.f32.mrb[4].mxu1 }
 0x258   :  { %v1067_v23 = vadd.f32 %v1066_v36, %v865_v32  ;;  %v1068_v38 = vpop.f32.mrb[5].mxu1 }
 0x259   :  { %v1069_v40 = vadd.f32 %v1068_v38, %v869_v34  ;;  %v1070_v41 = vpop.f32.mrb[6].mxu1 }
 0x25a   :  { %v1073_v43 = vmax.f32 %v1067_v23, 0.0  ;;  %v1071_v44 = vpop.f32.mrb[7].mxu1 }
 0x25b   :  { %v1074_v46 = vmax.f32 %v1069_v40, 0.0 }
 0x25c   :  { %v1075_v48 = vadd.f32 %v1073_v43, %v575_v42 }
 0x25d   :  { %v1076_v50 = vadd.f32 %v1074_v46, %v576_v45 }
 0x25e   :  { %v1077_v51 = vadd.f32 %v1075_v48, %v824_v47 }
 0x25f   :  { %v1078_v52 = vadd.f32 %v1076_v50, %v825_v49 }
 0x260   :  { %v1079_v54 = vpack.c.bf16 %v1077_v51, %v1077_v51 }
 0x261   :  { %v1080_v53 = vpack.c.bf16 %v1078_v52, %v1078_v52 }
 0x263   :  { %1317 = vmatprep.mubr.bf16.mxu0 %v1080_v53 }
 0x264   :  { %1318 = vmatmul.mubr.bf16.vlgmr.msra.gmra.mrb[16].mxu0 %v1079_v54 }
 0x337   :  { %v1319_v62 = vpop.f32.mrb[16].mxu0 }
 0x338   :  { %v1320_v63 = vadd.f32 %v1319_v62, %v1118_v60  ;;  %v1321_v0 = vpop.f32.mrb[17].mxu0 }
 0x339   :  { %v1322_v1 = vadd.f32 %v1321_v0, %v1122_v61  ;;  %v1323_v2 = vpop.f32.mrb[18].mxu0 }
 0x33a   :  { %v1326_v3 = vmax.f32 %v1320_v63, 0.0  ;;  %v1324_v5 = vpop.f32.mrb[19].mxu0 }
 0x33b   :  { %v1327_v6 = vmax.f32 %v1322_v1, 0.0 }
 0x33c   :  { %v1328_v8 = vpack.c.bf16 %v1326_v3, %v1326_v3 }
 0x33d   :  { %v1329_v7 = vpack.c.bf16 %v1327_v6, %v1327_v6 }
 0x33f   :  { %1497 = vmatprep.mubr.bf16.mxu1 %v1329_v7 }
 0x340   :  { %1498 = vmatmul.mubr.bf16.vlgmr.msra.gmra.mrb[8].mxu1 %v1328_v8 }
 0x413   :  { %v1681_v9 = vpop.f32.mrb[8].mxu1 }
 0x414   :  { %v1682_v22 = vpop.f32.mrb[9].mxu1 }
 0x415   :  { %v1683_v11 = vadd.f32 %v1682_v22, %v1681_v9  ;;  %v1684_v24 = vpop.f32.mrb[10].mxu1 }
 0x416   :  { %v1685_v12 = vpop.f32.mrb[11].mxu1 }
 0x417   :  { %v1500_v13 = vadd.f32 %v1683_v11, %v1648_v10 }
 0x419   :  { %1505 = vst [vmem:[%s2273_s13] sm:$0xff] %v1500_v13 }
 0x41a   :  { %1510 = vsyncpa [#allocation3], 1 }
 0x41b   :  { %1511 = vsyncpa [#allocation5], 1 }
 0x41c   :  { %1512 = vsyncpa [#allocation8], 1 }

</bundles_post_ra>
